<compile_context>
chip_gen: v7x
topology: tpu7x:2x2x1
jax: 0.10.0
libtpu: 0.0.40
codegen_flags: <defaults>
</compile_context>

<pallas_src>
import functools
import math

import jax
import jax.numpy as jnp
from jax.experimental import pallas as pl
from jax.experimental.pallas import tpu as pltpu

# ----------------------------------------------------------------------------
# configuration (mirrors the relevant cfg fields of FlowFormer)
# ----------------------------------------------------------------------------
CFG = dict(
    cnet="basicencoder",     # TODO(synk): 'twins' (twins_svt_large) not ported
    context_concat=False,
    patch=8,                 # /8 downsampling, as in BasicEncoder / twins
    context_dim=256,         # context encoder output dim
    feat_dim=128,            # feature encoder dim (cost volume features)
    cost_latent_dim=64,      # latent cost token dim
    hidden_dim=128,          # GRU hidden (net)
    inp_dim=128,             # context input features (inp)
    decoder_depth=3,         # default number of refinement iterations
)


# ----------------------------------------------------------------------------
# per-TPU-generation tuning: (vmem_limit_bytes, max_tile, softmax exp dtype)
# ----------------------------------------------------------------------------
def _tpu_config():
    kind = ""
    try:
        kind = jax.devices()[0].device_kind.lower()
    except Exception:
        pass
    mib = 1024 * 1024
    if "v6" in kind:                           # v6e: 128 MiB VMEM, bf16 EUP
        return 96 * mib, 512, jnp.bfloat16
    if "v5 lite" in kind or "v5e" in kind:     # v5e: 128 MiB VMEM, f32-only EUP
        return 96 * mib, 512, jnp.float32
    if "7x" in kind or "v7" in kind:           # v7x: 64 MiB VMEM per TensorCore
        return 44 * mib, 256, jnp.bfloat16
    return 48 * mib, 256, jnp.float32          # unknown: conservative defaults


def _choose_tile(hw, max_tile):
    """Largest multiple-of-128 divisor of hw <= ~1.25*max_tile (else whole)."""
    cap = max_tile + max_tile // 4
    if hw <= cap or hw % 128 != 0:
        # TODO(synk): masked tail tiles for HW not a multiple of 128.
        return hw
    best = 128
    t = 256
    while t <= cap:
        if hw % t == 0:
            best = t
        t += 128
    return best


# ----------------------------------------------------------------------------
# small in-kernel helpers (bf16 MXU matmuls with f32 accumulation)
# ----------------------------------------------------------------------------
def _dot(a, b):
    return jnp.dot(a.astype(jnp.bfloat16), b.astype(jnp.bfloat16),
                   preferred_element_type=jnp.float32)


def _dot_t(a, b):
    """a^T @ b (contract dim 0 of both)."""
    return jax.lax.dot_general(
        a.astype(jnp.bfloat16), b.astype(jnp.bfloat16),
        (((0,), (0,)), ((), ())), preferred_element_type=jnp.float32)


def _dot_nt(a, b):
    """a @ b^T (contract dim 1 of both)."""
    return jax.lax.dot_general(
        a.astype(jnp.bfloat16), b.astype(jnp.bfloat16),
        (((1,), (1,)), ((), ())), preferred_element_type=jnp.float32)


def _mat2(flow, w2):
    """(M, 2) @ (2, N) as a VPU broadcast (avoids a K=2 MXU push)."""
    return flow[:, 0:1] * w2[0:1, :] + flow[:, 1:2] * w2[1:2, :]


def _ln(x, g, b):
    mu = jnp.mean(x, axis=-1, keepdims=True)
    var = jnp.mean(jnp.square(x - mu), axis=-1, keepdims=True)
    return (x - mu) * jax.lax.rsqrt(var + 1e-5) * g + b


def _softmax(s, exp_dtype=jnp.float32):
    # running max / sum / reciprocal stay f32; exp optionally bf16 (v6e/v7x)
    m = jnp.max(s, axis=-1, keepdims=True)
    p = jnp.exp((s - m).astype(exp_dtype))
    denom = jnp.sum(p, axis=-1, keepdims=True, dtype=jnp.float32)
    inv = pl.reciprocal(denom, approx=True)
    return p * inv.astype(p.dtype)


# ----------------------------------------------------------------------------
# kernel 1: patch embedding (context + feature encoders), normalization folded
# ----------------------------------------------------------------------------
def _embed_kernel(img1_ref, img2_ref, w_cf_ref, b_cf_ref, w_f_ref, b_f_ref,
                  wc2t_ref, bc2t_ref,
                  ctx_ref, ctok_ref, f1_ref, f2_ref, *, dc):
    x1 = img1_ref[0]                                      # raw 0..255 tokens
    x2 = img2_ref[0]
    y1 = _dot(x1, w_cf_ref[...]) + b_cf_ref[...]          # fused [ctx | feat1]
    ctx = y1[:, :dc]
    ctx_ref[0] = ctx
    # ctx -> latent-token contribution (folded here so the memory encoder
    # never has to DMA the (HW, 256) context at all)
    ctok_ref[0] = (_dot(ctx, wc2t_ref[...]) + bc2t_ref[...]).astype(ctok_ref.dtype)
    f1_ref[0] = y1[:, dc:].astype(f1_ref.dtype)
    f2_ref[0] = (_dot(x2, w_f_ref[...]) + b_f_ref[...]).astype(f2_ref.dtype)


def patch_embed(img1_tok, img2_tok, w_cf, b_cf, w_f, b_f, wc2t, bc2t,
                *, dc, tm, vmem):
    B, HW, Kp = img1_tok.shape
    Df = w_f.shape[1]
    Dl = wc2t.shape[1]
    mt = HW // tm
    wspec = lambda w: pl.BlockSpec(w.shape, lambda b, m: (0, 0))
    return pl.pallas_call(
        functools.partial(_embed_kernel, dc=dc),
        out_shape=(
            jax.ShapeDtypeStruct((B, HW, dc), jnp.float32),   # context
            jax.ShapeDtypeStruct((B, HW, Dl), jnp.bfloat16),  # ctx->latent token
            jax.ShapeDtypeStruct((B, HW, Df), jnp.bfloat16),  # feat1
            jax.ShapeDtypeStruct((B, HW, Df), jnp.bfloat16),  # feat2
        ),
        grid=(B, mt),
        in_specs=[
            pl.BlockSpec((1, tm, Kp), lambda b, m: (b, m, 0)),
            pl.BlockSpec((1, tm, Kp), lambda b, m: (b, m, 0)),
            wspec(w_cf), wspec(b_cf), wspec(w_f), wspec(b_f),
            wspec(wc2t), wspec(bc2t),
        ],
        out_specs=(
            pl.BlockSpec((1, tm, dc), lambda b, m: (b, m, 0)),
            pl.BlockSpec((1, tm, Dl), lambda b, m: (b, m, 0)),
            pl.BlockSpec((1, tm, Df), lambda b, m: (b, m, 0)),
            pl.BlockSpec((1, tm, Df), lambda b, m: (b, m, 0)),
        ),
        compiler_params=pltpu.CompilerParams(
            dimension_semantics=("parallel", "parallel"),
            vmem_limit_bytes=vmem),
    )(img1_tok, img2_tok, w_cf, b_cf, w_f, b_f, wc2t, bc2t)


# ----------------------------------------------------------------------------
# kernel 2: cost projection  proj = f2^T @ (w_tok * scale)   (per batch)
# (the (HW, HW) cost volume is never materialized anywhere)
# ----------------------------------------------------------------------------
def _cost_proj_kernel(f2_ref, wtok_ref, proj_ref):
    proj_ref[0] = _dot_t(f2_ref[0], wtok_ref[...]).astype(proj_ref.dtype)


def cost_projection(feat2, w_tok_s, *, vmem):
    B, HW, Df = feat2.shape
    Dl = w_tok_s.shape[1]
    return pl.pallas_call(
        _cost_proj_kernel,
        out_shape=jax.ShapeDtypeStruct((B, Df, Dl), jnp.bfloat16),
        grid=(B,),
        in_specs=[
            pl.BlockSpec((1, HW, Df), lambda b: (b, 0, 0)),
            pl.BlockSpec((HW, Dl), lambda b: (0, 0)),
        ],
        out_specs=pl.BlockSpec((1, Df, Dl), lambda b: (b, 0, 0)),
        compiler_params=pltpu.CompilerParams(
            dimension_semantics=("parallel",), vmem_limit_bytes=vmem),
    )(feat2, w_tok_s)


# ----------------------------------------------------------------------------
# kernel 3: cost tokens + latent q / k^T / v  (gridded over (B, q-tiles))
# ----------------------------------------------------------------------------
def _tok_qkv_kernel(f1_ref, proj_ref, ctok_ref, btok_ref, ln1g_ref, ln1b_ref,
                    wqv_ref, wkt_ref,
                    tok_ref, q_ref, kt_ref, v_ref, *, dl):
    tok = (_dot(f1_ref[0], proj_ref[0]) + btok_ref[...]
           + ctok_ref[0].astype(jnp.float32))            # (tm, Dl)
    tok_ref[0] = tok
    y = _ln(tok, ln1g_ref[...], ln1b_ref[...])           # LN once, reused q/k/v
    qv = _dot(y, wqv_ref[...])                           # fused [q*scale | v]
    q_ref[0] = qv[:, :dl].astype(q_ref.dtype)
    v_ref[0] = qv[:, dl:].astype(v_ref.dtype)
    # k produced already transposed: (wk^T) @ y^T  (wk pre-transposed at trace)
    kt_ref[0] = _dot_nt(wkt_ref[...], y).astype(kt_ref.dtype)


def tok_qkv(feat1, proj, ctx_tok, b_tok, ln1g, ln1b, w_qv, w_k_t, *, tm, vmem):
    B, HW, Df = feat1.shape
    Dl = w_k_t.shape[0]
    mt = HW // tm
    wspec = lambda w: pl.BlockSpec(w.shape, lambda b, m: (0, 0))
    return pl.pallas_call(
        functools.partial(_tok_qkv_kernel, dl=Dl),
        out_shape=(
            jax.ShapeDtypeStruct((B, HW, Dl), jnp.float32),    # tok (residual)
            jax.ShapeDtypeStruct((B, HW, Dl), jnp.bfloat16),   # q (scale folded)
            jax.ShapeDtypeStruct((B, Dl, HW), jnp.bfloat16),   # k^T
            jax.ShapeDtypeStruct((B, HW, Dl), jnp.bfloat16),   # v
        ),
        grid=(B, mt),
        in_specs=[
            pl.BlockSpec((1, tm, Df), lambda b, m: (b, m, 0)),
            pl.BlockSpec((1, Df, Dl), lambda b, m: (b, 0, 0)),
            pl.BlockSpec((1, tm, Dl), lambda b, m: (b, m, 0)),
            wspec(b_tok), wspec(ln1g), wspec(ln1b), wspec(w_qv), wspec(w_k_t),
        ],
        out_specs=(
            pl.BlockSpec((1, tm, Dl), lambda b, m: (b, m, 0)),
            pl.BlockSpec((1, tm, Dl), lambda b, m: (b, m, 0)),
            pl.BlockSpec((1, Dl, tm), lambda b, m: (b, 0, m)),
            pl.BlockSpec((1, tm, Dl), lambda b, m: (b, m, 0)),
        ),
        compiler_params=pltpu.CompilerParams(
            dimension_semantics=("parallel", "parallel"),
            vmem_limit_bytes=vmem),
    )(feat1, proj, ctx_tok, b_tok, ln1g, ln1b, w_qv, w_k_t)


# ----------------------------------------------------------------------------
# kernel 4: q-tiled latent self-attention + MLP + decoder k/v projection
# (only a (tq, HW) score block ever lives in VMEM; grid=(B, q-tiles))
# ----------------------------------------------------------------------------
def _attn_mlp_kernel(tok_ref, q_ref, kt_ref, v_ref,
                     wo_ref, ln2g_ref, ln2b_ref,
                     mw1_ref, mb1_ref, mw2_ref, mb2_ref,
                     dwkt_ref, dwv_ref,
                     kdec_ref, vdec_ref, *, exp_dtype):
    # TODO(synk): online-softmax kv-tiling for HW where a (tq, HW) block is
    # itself too large; (tq, HW) fits comfortably for typical flow resolutions.
    p = _softmax(_dot(q_ref[0], kt_ref[0]), exp_dtype)          # (tm, HW)
    x = tok_ref[0] + _dot(_dot(p, v_ref[0]), wo_ref[...])
    y2 = _ln(x, ln2g_ref[...], ln2b_ref[...])
    h = jax.nn.gelu(_dot(y2, mw1_ref[...]) + mb1_ref[...])
    cm = x + _dot(h, mw2_ref[...]) + mb2_ref[...]               # cost memory
    # decoder cross-attention k/v computed once here (hoisted out of decoder)
    kdec_ref[0] = _dot_nt(dwkt_ref[...], cm).astype(kdec_ref.dtype)  # (Dl, tm)
    vdec_ref[0] = _dot(cm, dwv_ref[...]).astype(vdec_ref.dtype)      # (tm, Dl)


def encoder_attention(tok, q, k_t, v, wo, ln2g, ln2b, mw1, mb1, mw2, mb2,
                      dwk_t, dwv, *, tm, vmem, exp_dtype):
    B, HW, Dl = tok.shape
    mt = HW // tm
    wspec = lambda w: pl.BlockSpec(w.shape, lambda b, m: (0, 0))
    return pl.pallas_call(
        functools.partial(_attn_mlp_kernel, exp_dtype=exp_dtype),
        out_shape=(
            jax.ShapeDtypeStruct((B, Dl, HW), jnp.bfloat16),   # decoder k^T
            jax.ShapeDtypeStruct((B, HW, Dl), jnp.bfloat16),   # decoder v
        ),
        grid=(B, mt),
        in_specs=[
            pl.BlockSpec((1, tm, Dl), lambda b, m: (b, m, 0)),   # tok tile
            pl.BlockSpec((1, tm, Dl), lambda b, m: (b, m, 0)),   # q tile
            pl.BlockSpec((1, Dl, HW), lambda b, m: (b, 0, 0)),   # full k^T
            pl.BlockSpec((1, HW, Dl), lambda b, m: (b, 0, 0)),   # full v
            wspec(wo), wspec(ln2g), wspec(ln2b),
            wspec(mw1), wspec(mb1), wspec(mw2), wspec(mb2),
            wspec(dwk_t), wspec(dwv),
        ],
        out_specs=(
            pl.BlockSpec((1, Dl, tm), lambda b, m: (b, 0, m)),
            pl.BlockSpec((1, tm, Dl), lambda b, m: (b, m, 0)),
        ),
        compiler_params=pltpu.CompilerParams(
            dimension_semantics=("parallel", "parallel"),
            vmem_limit_bytes=vmem),
    )(tok, q, k_t, v, wo, ln2g, ln2b, mw1, mb1, mw2, mb2, dwk_t, dwv)


# ----------------------------------------------------------------------------
# kernel 5: fused memory decoder — ALL refinement iterations in one kernel
# ----------------------------------------------------------------------------
def _decoder_kernel(kt_ref, v_ref, ctx_ref, flow0_ref, flow0t_ref,
                    wqry_i_ref, wqry_f_ref, bqry_ref, dwq_ref, dwo_ref,
                    wmot_c_ref, wmot_f_ref, bmot_ref,
                    wgate_i_ref, wzr_h_ref, wzr_m_ref, bzr_ref,
                    wg_h_ref, wg_m_ref, bg_ref,
                    fh_w1_ref, fh_b1_ref, fh_w2_ref, fh_w2t_ref,
                    fh_b2_ref, fh_b2t_ref,
                    preds_ref, *, iters, hdim, exp_dtype, unroll):
    kt = kt_ref[0]                                     # (Dl, HW) bf16, hoisted
    v = v_ref[0]                                       # (HW, Dl) bf16, hoisted
    ctx = ctx_ref[0]                                   # (tm, Dc) f32
    net0 = jnp.tanh(ctx[:, :hdim])                     # GRU hidden
    inp = jnp.maximum(ctx[:, hdim:], 0.0)              # context input
    flow0 = flow0_ref[0]                               # (tm, 2)  f32
    flow0_t = flow0t_ref[0]                            # (2, tm)  f32 (lane-dense)

    # loop-invariant hoists (inp contributions, fused N=384 gate matmul)
    q_base = _dot(inp, wqry_i_ref[...]) + bqry_ref[...]
    gates_i = _dot(inp, wgate_i_ref[...])              # (tm, 3*Dh) = [z|r|g]
    gates_zr_i = gates_i[:, :2 * hdim]
    gg_i = gates_i[:, 2 * hdim:]
    wqry_f = wqry_f_ref[...]
    wmot_f = wmot_f_ref[...]
    fh_b2 = fh_b2_ref[...]
    fh_b2t = fh_b2t_ref[...]

    def body(it, carry):
        net, flow, flow_t = carry
        # query projection of concat([inp, flow]) via weight split
        query = q_base + _mat2(flow, wqry_f)                       # (tm, Dl)
        qd = _dot(query, dwq_ref[...])                             # scale folded
        p = _softmax(_dot(qd, kt), exp_dtype)                      # (tm, HW)
        cost_feat = _dot(_dot(p, v), dwo_ref[...])                 # (tm, Dl)
        # motion encoder: concat([cost_feat, flow]) @ w_mot via weight split
        motion = jnp.maximum(
            _dot(cost_feat, wmot_c_ref[...]) + _mat2(flow, wmot_f)
            + bmot_ref[...], 0.0)                                  # (tm, Dh)
        # GRU; hx/rhx concats replaced by weight-split + N-fused matmuls
        zr = jax.nn.sigmoid(_dot(net, wzr_h_ref[...])
                            + _dot(motion, wzr_m_ref[...])
                            + gates_zr_i + bzr_ref[...])           # (tm, 2Dh)
        z = zr[:, :hdim]
        r = zr[:, hdim:]
        g = jnp.tanh(_dot(r * net, wg_h_ref[...]) + gg_i
                     + _dot(motion, wg_m_ref[...]) + bg_ref[...])
        net = (1.0 - z) * net + z * g
        # flow head + flow update (kept in registers/VMEM)
        dh = jnp.maximum(_dot(net, fh_w1_ref[...]) + fh_b1_ref[...], 0.0)
        flow = flow + _dot(dh, fh_w2_ref[...]) + fh_b2             # (tm, 2)
        # lane-dense mirror of the flow for the prediction store
        flow_t = flow_t + _dot_nt(fh_w2t_ref[...], dh) + fh_b2t    # (2, tm)
        preds_ref[0, it, :, :] = flow_t.astype(preds_ref.dtype)
        return net, flow, flow_t

    jax.lax.fori_loop(0, iters, body, (net0, flow0, flow0_t), unroll=unroll)


def memory_decoder(k_t, v, ctx, flow0, flow0_t, weights, *, iters, hdim, tm,
                   vmem, exp_dtype):
    B, Dl, HW = k_t.shape
    Dc = ctx.shape[-1]
    mt = HW // tm
    wspec = lambda w: pl.BlockSpec(w.shape, lambda b, m: (0, 0))
    return pl.pallas_call(
        functools.partial(_decoder_kernel, iters=iters, hdim=hdim,
                          exp_dtype=exp_dtype, unroll=bool(iters <= 4)),
        out_shape=jax.ShapeDtypeStruct((B, iters, 2, HW), jnp.float32),
        grid=(B, mt),
        in_specs=[
            pl.BlockSpec((1, Dl, HW), lambda b, m: (b, 0, 0)),   # k^T (whole)
            pl.BlockSpec((1, HW, Dl), lambda b, m: (b, 0, 0)),   # v   (whole)
            pl.BlockSpec((1, tm, Dc), lambda b, m: (b, m, 0)),   # context tile
            pl.BlockSpec((1, tm, 2), lambda b, m: (b, m, 0)),    # flow init
            pl.BlockSpec((1, 2, tm), lambda b, m: (b, 0, m)),    # flow init ^T
        ] + [wspec(w) for w in weights],
        out_specs=pl.BlockSpec((1, iters, 2, tm), lambda b, m: (b, 0, 0, m)),
        compiler_params=pltpu.CompilerParams(
            dimension_semantics=("parallel", "parallel"),
            vmem_limit_bytes=vmem),
    )(k_t, v, ctx, flow0, flow0_t, *weights)


# ----------------------------------------------------------------------------
# glue helpers (data movement only)
# ----------------------------------------------------------------------------
def patchify(img, p):
    # NCHW image -> (B, H/p * W/p, C*p*p) tokens
    B, C, H, W = img.shape
    x = img.reshape(B, C, H // p, p, W // p, p)
    x = x.transpose(0, 2, 4, 1, 3, 5)
    return x.reshape(B, (H // p) * (W // p), C * p * p)


def upsample_all(preds, H8, W8):
    # (B, iters, 2, HW) flows at 1/8 resolution -> list of NCHW (B, 2, H, W)
    # TODO(synk): FlowFormer uses learned convex-mask upsampling; bilinear here.
    B, it, _, HW = preds.shape
    f = preds.reshape(B * it, 2, H8, W8)
    f = jax.image.resize(f, (B * it, 2, H8 * 8, W8 * 8), method="bilinear") * 8.0
    f = f.reshape(B, it, 2, H8 * 8, W8 * 8)
    return [f[:, i] for i in range(it)]


# ----------------------------------------------------------------------------
# parameters (deterministic synthetic init, same structure as before)
# ----------------------------------------------------------------------------
def init_params(key, hw, cfg=CFG):
    p = cfg["patch"]
    Kp = 3 * p * p
    Dc, Df, Dl = cfg["context_dim"], cfg["feat_dim"], cfg["cost_latent_dim"]
    Dh, Di = cfg["hidden_dim"], cfg["inp_dim"]

    def dense(k, shape):
        return 0.02 * jax.random.normal(k, shape, jnp.float32)

    keys = iter(jax.random.split(key, 64))
    params = {
        # context encoder (BasicEncoder surrogate: 8x8 patch embed -> 256)
        "w_ctx": dense(next(keys), (Kp, Dc)), "b_ctx": jnp.zeros((1, Dc)),
        # memory encoder: shared feature encoder (patch embed -> 128)
        "w_feat": dense(next(keys), (Kp, Df)), "b_feat": jnp.zeros((1, Df)),
        # cost tokenizer: per-source-pixel cost row (length HW) -> latent dim
        "w_tok": dense(next(keys), (hw, Dl)), "b_tok": jnp.zeros((1, Dl)),
        "w_ctx2tok": dense(next(keys), (Dc, Dl)), "b_ctx2tok": jnp.zeros((1, Dl)),
        # latent-cost transformer block
        "ln1_g": jnp.ones((1, Dl)), "ln1_b": jnp.zeros((1, Dl)),
        "ln2_g": jnp.ones((1, Dl)), "ln2_b": jnp.zeros((1, Dl)),
        "enc_wq": dense(next(keys), (Dl, Dl)), "enc_wk": dense(next(keys), (Dl, Dl)),
        "enc_wv": dense(next(keys), (Dl, Dl)), "enc_wo": dense(next(keys), (Dl, Dl)),
        "mlp_w1": dense(next(keys), (Dl, 2 * Dl)), "mlp_b1": jnp.zeros((1, 2 * Dl)),
        "mlp_w2": dense(next(keys), (2 * Dl, Dl)), "mlp_b2": jnp.zeros((1, Dl)),
        # memory decoder
        "w_qry": dense(next(keys), (Di + 2, Dl)), "b_qry": jnp.zeros((1, Dl)),
        "dec_wq": dense(next(keys), (Dl, Dl)), "dec_wk": dense(next(keys), (Dl, Dl)),
        "dec_wv": dense(next(keys), (Dl, Dl)), "dec_wo": dense(next(keys), (Dl, Dl)),
        "w_mot": dense(next(keys), (Dl + 2, Dh)), "b_mot": jnp.zeros((1, Dh)),
        "gru_wz": dense(next(keys), (Dh + Di + Dh, Dh)), "gru_bz": jnp.zeros((1, Dh)),
        "gru_wr": dense(next(keys), (Dh + Di + Dh, Dh)), "gru_br": jnp.zeros((1, Dh)),
        "gru_wq": dense(next(keys), (Dh + Di + Dh, Dh)), "gru_bq": jnp.zeros((1, Dh)),
        "fh_w1": dense(next(keys), (Dh, Dh)), "fh_b1": jnp.zeros((1, Dh)),
        "fh_w2": dense(next(keys), (Dh, 2)), "fh_b2": jnp.zeros((1, 2)),
    }
    return params


# ----------------------------------------------------------------------------
# FlowFormer forward
# ----------------------------------------------------------------------------
def flowformer_forward(params, image1, image2, flow_init=None, iters=None, cfg=CFG):
    if iters is None:
        iters = cfg["decoder_depth"]
    p = cfg["patch"]
    B, C, H, W = image1.shape
    H8, W8 = H // p, W // p
    HW = H8 * W8
    Dc, Df, Dl = cfg["context_dim"], cfg["feat_dim"], cfg["cost_latent_dim"]
    Dh, Di = cfg["hidden_dim"], cfg["inp_dim"]

    vmem, max_tile, exp_dtype = _tpu_config()
    tm = _choose_tile(HW, max_tile)
    bf16 = lambda w: w.astype(jnp.bfloat16)   # MXU operands in bf16

    # ---------------- trace-time weight preparation ----------------
    # fold 2*(x/255)-1 image normalization into the patch-embedding weights
    w_ctx_n = (2.0 / 255.0) * params["w_ctx"]
    b_ctx_n = params["b_ctx"] - jnp.sum(params["w_ctx"], axis=0, keepdims=True)
    w_feat_n = (2.0 / 255.0) * params["w_feat"]
    b_feat_n = params["b_feat"] - jnp.sum(params["w_feat"], axis=0, keepdims=True)
    w_cf = jnp.concatenate([w_ctx_n, w_feat_n], axis=1)      # (Kp, Dc+Df)
    b_cf = jnp.concatenate([b_ctx_n, b_feat_n], axis=1)

    # encoder attention: scale folded into wq, q|v N-fused, k pre-transposed
    s_attn = 1.0 / math.sqrt(Dl)
    w_qv = jnp.concatenate([params["enc_wq"] * s_attn, params["enc_wv"]], axis=1)
    w_k_t = params["enc_wk"].T

    # cost tokenizer scale folded into w_tok
    w_tok_s = params["w_tok"] * (1.0 / math.sqrt(Df))

    # decoder cross-attention: scale folded into wq, k weight pre-transposed
    dwq_s = params["dec_wq"] * s_attn
    dwk_t = params["dec_wk"].T

    # concat-free weight splits (same algebra as torch.cat([...]) @ W)
    wqry_i, wqry_f = params["w_qry"][:Di], params["w_qry"][Di:]
    wmot_c, wmot_f = params["w_mot"][:Dl], params["w_mot"][Dl:]

    def split_gru(w):
        return w[:Dh], w[Dh:Dh + Di], w[Dh + Di:]

    wz_h, wz_i, wz_m = split_gru(params["gru_wz"])
    wr_h, wr_i, wr_m = split_gru(params["gru_wr"])
    wg_h, wg_i, wg_m = split_gru(params["gru_wq"])
    # N-fused GRU weights (fill the 256-wide MXU on v6e/v7x)
    w_zr_h = jnp.concatenate([wz_h, wr_h], axis=1)            # (Dh, 2Dh)
    w_zr_m = jnp.concatenate([wz_m, wr_m], axis=1)            # (Dh, 2Dh)
    b_zr = jnp.concatenate([params["gru_bz"], params["gru_br"]], axis=1)
    w_gate_i = jnp.concatenate([wz_i, wr_i, wg_i], axis=1)    # (Di, 3Dh)

    fh_w2t = params["fh_w2"].T                                # (2, Dh)
    fh_b2t = params["fh_b2"].T                                # (2, 1)

    # ---------------- kernel 1: patch embedding ----------------
    img1_tok = patchify(image1, p)
    img2_tok = patchify(image2, p)
    context, ctx_tok, feat1, feat2 = patch_embed(
        img1_tok, img2_tok,
        bf16(w_cf), b_cf, bf16(w_feat_n), b_feat_n,
        bf16(params["w_ctx2tok"]), params["b_ctx2tok"],
        dc=Dc, tm=tm, vmem=vmem)

    # ---------------- kernel 2: cost projection ----------------
    proj = cost_projection(feat2, bf16(w_tok_s), vmem=vmem)

    # ---------------- kernel 3: cost tokens + latent q/k^T/v ----------------
    tok, q, k_t, v = tok_qkv(
        feat1, proj, ctx_tok, params["b_tok"],
        params["ln1_g"], params["ln1_b"], bf16(w_qv), bf16(w_k_t),
        tm=tm, vmem=vmem)

    # ------- kernel 4: latent attention + MLP + decoder k/v projection -------
    dec_k_t, dec_v = encoder_attention(
        tok, q, k_t, v,
        bf16(params["enc_wo"]), params["ln2_g"], params["ln2_b"],
        bf16(params["mlp_w1"]), params["mlp_b1"],
        bf16(params["mlp_w2"]), params["mlp_b2"],
        bf16(dwk_t), bf16(params["dec_wv"]),
        tm=tm, vmem=vmem, exp_dtype=exp_dtype)

    # ---------------- kernel 5: memory decoder ----------------
    flow0 = jnp.zeros((B, HW, 2), jnp.float32)
    if flow_init is not None:  # flow_init expected as (B, 2, H8, W8)
        flow0 = flow0 + jnp.transpose(flow_init, (0, 2, 3, 1)).reshape(B, HW, 2)
    flow0_t = jnp.transpose(flow0, (0, 2, 1))                 # (B, 2, HW)

    dec_ws = (
        bf16(wqry_i), wqry_f, params["b_qry"], bf16(dwq_s), bf16(params["dec_wo"]),
        bf16(wmot_c), wmot_f, params["b_mot"],
        bf16(w_gate_i), bf16(w_zr_h), bf16(w_zr_m), b_zr,
        bf16(wg_h), bf16(wg_m), params["gru_bq"],
        bf16(params["fh_w1"]), params["fh_b1"],
        bf16(params["fh_w2"]), bf16(fh_w2t), params["fh_b2"], fh_b2t,
    )
    preds = memory_decoder(
        dec_k_t, dec_v, context, flow0, flow0_t, dec_ws,
        iters=iters, hdim=Dh, tm=tm, vmem=vmem, exp_dtype=exp_dtype)

    # one upsampling pass for all iterations (per-iteration output list)
    return upsample_all(preds, H8, W8)


# ----------------------------------------------------------------------------
if __name__ == "__main__":
    key = jax.random.PRNGKey(0)
    k1, k2 = jax.random.split(key)
    B, C, H, W = 2, 3, 32, 32
    image1 = jax.random.uniform(k1, (B, C, H, W), jnp.float32, 0.0, 255.0)
    image2 = jax.random.uniform(k2, (B, C, H, W), jnp.float32, 0.0, 255.0)

    HW = (H // CFG["patch"]) * (W // CFG["patch"])
    params = init_params(jax.random.PRNGKey(42), HW)

    flow_predictions = flowformer_forward(params, image1, image2, iters=3)
    jax.block_until_ready(flow_predictions[-1])
    assert flow_predictions[-1].shape == (B, 2, H, W)
    assert all(bool(jnp.all(jnp.isfinite(f))) for f in flow_predictions)
    print("KERNEL_OK")
</pallas_src>

<mosaic_0001>
module attributes {stable_mosaic.version = 11 : i64} {
  func.func @_embed_kernel(%arg0: i32, %arg1: i32, %arg2: memref<1x16x192xf32, #tpu.memory_space<vmem>>, %arg3: memref<1x16x192xf32, #tpu.memory_space<vmem>>, %arg4: memref<192x384xbf16, #tpu.memory_space<vmem>>, %arg5: memref<1x384xf32, #tpu.memory_space<vmem>>, %arg6: memref<192x128xbf16, #tpu.memory_space<vmem>>, %arg7: memref<1x128xf32, #tpu.memory_space<vmem>>, %arg8: memref<256x64xbf16, #tpu.memory_space<vmem>>, %arg9: memref<1x64xf32, #tpu.memory_space<vmem>>, %arg10: memref<1x16x256xf32, #tpu.memory_space<vmem>>, %arg11: memref<1x16x64xbf16, #tpu.memory_space<vmem>>, %arg12: memref<1x16x128xbf16, #tpu.memory_space<vmem>>, %arg13: memref<1x16x128xbf16, #tpu.memory_space<vmem>>) attributes {dimension_semantics = [#tpu.dimension_semantics<parallel>, #tpu.dimension_semantics<parallel>], iteration_bounds = array<i64: 2, 1>, scalar_prefetch = 0 : i64, scratch_operands = 0 : i64, tpu.core_type = #tpu.core_type<tc>, window_params = [{transform_indices = @transform_0, window_bounds = array<i64: 1, 16, 192>}, {transform_indices = @transform_1, window_bounds = array<i64: 1, 16, 192>}, {pipeline_mode = #tpu.pipeline_mode<synchronous>, transform_indices = @transform_2, window_bounds = array<i64: 192, 384>}, {pipeline_mode = #tpu.pipeline_mode<synchronous>, transform_indices = @transform_3, window_bounds = array<i64: 1, 384>}, {pipeline_mode = #tpu.pipeline_mode<synchronous>, transform_indices = @transform_4, window_bounds = array<i64: 192, 128>}, {pipeline_mode = #tpu.pipeline_mode<synchronous>, transform_indices = @transform_5, window_bounds = array<i64: 1, 128>}, {pipeline_mode = #tpu.pipeline_mode<synchronous>, transform_indices = @transform_6, window_bounds = array<i64: 256, 64>}, {pipeline_mode = #tpu.pipeline_mode<synchronous>, transform_indices = @transform_7, window_bounds = array<i64: 1, 64>}, {transform_indices = @transform_8, window_bounds = array<i64: 1, 16, 256>}, {transform_indices = @transform_9, window_bounds = array<i64: 1, 16, 64>}, {transform_indices = @transform_10, window_bounds = array<i64: 1, 16, 128>}, {transform_indices = @transform_11, window_bounds = array<i64: 1, 16, 128>}]} {
    %c0 = arith.constant 0 : index
    %c0_0 = arith.constant 0 : index
    %c0_1 = arith.constant 0 : index
    %0 = vector.load %arg2[%c0, %c0_0, %c0_1] : memref<1x16x192xf32, #tpu.memory_space<vmem>>, vector<1x16x192xf32>
    %1 = vector.shape_cast %0 : vector<1x16x192xf32> to vector<16x192xf32>
    %c0_2 = arith.constant 0 : index
    %c0_3 = arith.constant 0 : index
    %c0_4 = arith.constant 0 : index
    %2 = vector.load %arg3[%c0_2, %c0_3, %c0_4] : memref<1x16x192xf32, #tpu.memory_space<vmem>>, vector<1x16x192xf32>
    %3 = vector.shape_cast %2 : vector<1x16x192xf32> to vector<16x192xf32>
    %c0_5 = arith.constant 0 : index
    %c0_6 = arith.constant 0 : index
    %4 = vector.load %arg4[%c0_5, %c0_6] : memref<192x384xbf16, #tpu.memory_space<vmem>>, vector<192x384xbf16>
    %5 = arith.truncf %1 : vector<16x192xf32> to vector<16x192xbf16>
    %cst = arith.constant dense<0.000000e+00> : vector<16x384xf32>
    %6 = tpu.matmul %5, %4, %cst {dimension_numbers = #tpu.dot_dimension_numbers<[1], [0], [0], [1], [0, 0, 1, 1], [], []>} : vector<16x192xbf16>, vector<192x384xbf16>, vector<16x384xf32> -> vector<16x384xf32>
    %c0_7 = arith.constant 0 : index
    %c0_8 = arith.constant 0 : index
    %7 = vector.load %arg5[%c0_7, %c0_8] : memref<1x384xf32, #tpu.memory_space<vmem>>, vector<1x384xf32>
    %8 = vector.broadcast %7 : vector<1x384xf32> to vector<16x384xf32>
    %9 = arith.addf %6, %8 : vector<16x384xf32>
    %10 = vector.extract_strided_slice %9 {offsets = [0, 0], sizes = [16, 256], strides = [1, 1]} : vector<16x384xf32> to vector<16x256xf32>
    %c0_9 = arith.constant 0 : index
    %c0_10 = arith.constant 0 : index
    %c0_11 = arith.constant 0 : index
    %11 = vector.load %arg10[%c0_9, %c0_10, %c0_11] : memref<1x16x256xf32, #tpu.memory_space<vmem>>, vector<1x16x256xf32>
    %12 = vector.shape_cast %11 : vector<1x16x256xf32> to vector<16x256xf32>
    %13 = vector.shape_cast %10 : vector<16x256xf32> to vector<1x16x256xf32>
    tpu.vector_store %arg10[%c0_9, %c0_10, %c0_11], %13 {strides = array<i32>} : memref<1x16x256xf32, #tpu.memory_space<vmem>>, vector<1x16x256xf32>,
    %c0_12 = arith.constant 0 : index
    %c0_13 = arith.constant 0 : index
    %14 = vector.load %arg8[%c0_12, %c0_13] : memref<256x64xbf16, #tpu.memory_space<vmem>>, vector<256x64xbf16>
    %15 = arith.truncf %10 : vector<16x256xf32> to vector<16x256xbf16>
    %cst_14 = arith.constant dense<0.000000e+00> : vector<16x64xf32>
    %16 = tpu.matmul %15, %14, %cst_14 {dimension_numbers = #tpu.dot_dimension_numbers<[1], [0], [0], [1], [0, 0, 1, 1], [], []>} : vector<16x256xbf16>, vector<256x64xbf16>, vector<16x64xf32> -> vector<16x64xf32>
    %c0_15 = arith.constant 0 : index
    %c0_16 = arith.constant 0 : index
    %17 = vector.load %arg9[%c0_15, %c0_16] : memref<1x64xf32, #tpu.memory_space<vmem>>, vector<1x64xf32>
    %18 = vector.broadcast %17 : vector<1x64xf32> to vector<16x64xf32>
    %19 = arith.addf %16, %18 : vector<16x64xf32>
    %20 = arith.truncf %19 : vector<16x64xf32> to vector<16x64xbf16>
    %c0_17 = arith.constant 0 : index
    %c0_18 = arith.constant 0 : index
    %c0_19 = arith.constant 0 : index
    %21 = vector.load %arg11[%c0_17, %c0_18, %c0_19] : memref<1x16x64xbf16, #tpu.memory_space<vmem>>, vector<1x16x64xbf16>
    %22 = vector.shape_cast %21 : vector<1x16x64xbf16> to vector<16x64xbf16>
    %23 = vector.shape_cast %20 : vector<16x64xbf16> to vector<1x16x64xbf16>
    tpu.vector_store %arg11[%c0_17, %c0_18, %c0_19], %23 {strides = array<i32>} : memref<1x16x64xbf16, #tpu.memory_space<vmem>>, vector<1x16x64xbf16>,
    %24 = vector.extract_strided_slice %9 {offsets = [0, 256], sizes = [16, 128], strides = [1, 1]} : vector<16x384xf32> to vector<16x128xf32>
    %25 = arith.truncf %24 : vector<16x128xf32> to vector<16x128xbf16>
    %c0_20 = arith.constant 0 : index
    %c0_21 = arith.constant 0 : index
    %c0_22 = arith.constant 0 : index
    %26 = vector.load %arg12[%c0_20, %c0_21, %c0_22] : memref<1x16x128xbf16, #tpu.memory_space<vmem>>, vector<1x16x128xbf16>
    %27 = vector.shape_cast %26 : vector<1x16x128xbf16> to vector<16x128xbf16>
    %28 = vector.shape_cast %25 : vector<16x128xbf16> to vector<1x16x128xbf16>
    tpu.vector_store %arg12[%c0_20, %c0_21, %c0_22], %28 {strides = array<i32>} : memref<1x16x128xbf16, #tpu.memory_space<vmem>>, vector<1x16x128xbf16>,
    %c0_23 = arith.constant 0 : index
    %c0_24 = arith.constant 0 : index
    %29 = vector.load %arg6[%c0_23, %c0_24] : memref<192x128xbf16, #tpu.memory_space<vmem>>, vector<192x128xbf16>
    %30 = arith.truncf %3 : vector<16x192xf32> to vector<16x192xbf16>
    %cst_25 = arith.constant dense<0.000000e+00> : vector<16x128xf32>
    %31 = tpu.matmul %30, %29, %cst_25 {dimension_numbers = #tpu.dot_dimension_numbers<[1], [0], [0], [1], [0, 0, 1, 1], [], []>} : vector<16x192xbf16>, vector<192x128xbf16>, vector<16x128xf32> -> vector<16x128xf32>
    %c0_26 = arith.constant 0 : index
    %c0_27 = arith.constant 0 : index
    %32 = vector.load %arg7[%c0_26, %c0_27] : memref<1x128xf32, #tpu.memory_space<vmem>>, vector<1x128xf32>
    %33 = vector.broadcast %32 : vector<1x128xf32> to vector<16x128xf32>
    %34 = arith.addf %31, %33 : vector<16x128xf32>
    %35 = arith.truncf %34 : vector<16x128xf32> to vector<16x128xbf16>
    %c0_28 = arith.constant 0 : index
    %c0_29 = arith.constant 0 : index
    %c0_30 = arith.constant 0 : index
    %36 = vector.load %arg13[%c0_28, %c0_29, %c0_30] : memref<1x16x128xbf16, #tpu.memory_space<vmem>>, vector<1x16x128xbf16>
    %37 = vector.shape_cast %36 : vector<1x16x128xbf16> to vector<16x128xbf16>
    %38 = vector.shape_cast %35 : vector<16x128xbf16> to vector<1x16x128xbf16>
    tpu.vector_store %arg13[%c0_28, %c0_29, %c0_30], %38 {strides = array<i32>} : memref<1x16x128xbf16, #tpu.memory_space<vmem>>, vector<1x16x128xbf16>,
    return
  }
  func.func @transform_0(%arg0: i32, %arg1: i32) -> (i32, i32, i32) {
    %c0_i32 = arith.constant 0 : i32
    %c0_i32_0 = arith.constant 0 : i32
    return %arg0, %arg1, %c0_i32 : i32, i32, i32
  }
  func.func @transform_1(%arg0: i32, %arg1: i32) -> (i32, i32, i32) {
    %c0_i32 = arith.constant 0 : i32
    %c0_i32_0 = arith.constant 0 : i32
    return %arg0, %arg1, %c0_i32 : i32, i32, i32
  }
  func.func @transform_2(%arg0: i32, %arg1: i32) -> (i32, i32) {
    %c0_i32 = arith.constant 0 : i32
    %c0_i32_0 = arith.constant 0 : i32
    %c0_i32_1 = arith.constant 0 : i32
    return %c0_i32, %c0_i32_0 : i32, i32
  }
  func.func @transform_3(%arg0: i32, %arg1: i32) -> (i32, i32) {
    %c0_i32 = arith.constant 0 : i32
    %c0_i32_0 = arith.constant 0 : i32
    %c0_i32_1 = arith.constant 0 : i32
    return %c0_i32, %c0_i32_0 : i32, i32
  }
  func.func @transform_4(%arg0: i32, %arg1: i32) -> (i32, i32) {
    %c0_i32 = arith.constant 0 : i32
    %c0_i32_0 = arith.constant 0 : i32
    %c0_i32_1 = arith.constant 0 : i32
    return %c0_i32, %c0_i32_0 : i32, i32
  }
  func.func @transform_5(%arg0: i32, %arg1: i32) -> (i32, i32) {
    %c0_i32 = arith.constant 0 : i32
    %c0_i32_0 = arith.constant 0 : i32
    %c0_i32_1 = arith.constant 0 : i32
    return %c0_i32, %c0_i32_0 : i32, i32
  }
  func.func @transform_6(%arg0: i32, %arg1: i32) -> (i32, i32) {
    %c0_i32 = arith.constant 0 : i32
    %c0_i32_0 = arith.constant 0 : i32
    %c0_i32_1 = arith.constant 0 : i32
    return %c0_i32, %c0_i32_0 : i32, i32
  }
  func.func @transform_7(%arg0: i32, %arg1: i32) -> (i32, i32) {
    %c0_i32 = arith.constant 0 : i32
    %c0_i32_0 = arith.constant 0 : i32
    %c0_i32_1 = arith.constant 0 : i32
    return %c0_i32, %c0_i32_0 : i32, i32
  }
  func.func @transform_8(%arg0: i32, %arg1: i32) -> (i32, i32, i32) {
    %c0_i32 = arith.constant 0 : i32
    %c0_i32_0 = arith.constant 0 : i32
    return %arg0, %arg1, %c0_i32 : i32, i32, i32
  }
  func.func @transform_9(%arg0: i32, %arg1: i32) -> (i32, i32, i32) {
    %c0_i32 = arith.constant 0 : i32
    %c0_i32_0 = arith.constant 0 : i32
    return %arg0, %arg1, %c0_i32 : i32, i32, i32
  }
  func.func @transform_10(%arg0: i32, %arg1: i32) -> (i32, i32, i32) {
    %c0_i32 = arith.constant 0 : i32
    %c0_i32_0 = arith.constant 0 : i32
    return %arg0, %arg1, %c0_i32 : i32, i32, i32
  }
  func.func @transform_11(%arg0: i32, %arg1: i32) -> (i32, i32, i32) {
    %c0_i32 = arith.constant 0 : i32
    %c0_i32_0 = arith.constant 0 : i32
    return %arg0, %arg1, %c0_i32 : i32, i32, i32
  }
}

</mosaic_0001>

<bundles_post_ra>
// kernel: tpu_custom_call.1
= control target key start
LH: loop header
LB: loop body
LE: loop exit
PB: predicated region body
PF: predicated region fallthrough
CT: control target
= control target key end

     0   :  { %s2661_s0 = inlined_call_operand.vmem [shape: f32[2,16,192], index: 0, kind: input, shape index: {}]   ;;  %s2662_s1 = inlined_call_operand.hbm [shape: f32[2,16,192], index: 1, kind: input, shape index: {}]   ;;  %s2663_s2 = inlined_call_operand.hbm [shape: bf16[192,384], index: 2, kind: input, shape index: {}]   ;;  %s2664_s3 = inlined_call_operand.vmem [shape: f32[1,384], index: 3, kind: input, shape index: {}]   ;;  %s2665_s4 = inlined_call_operand.vmem [shape: bf16[192,128], index: 4, kind: input, shape index: {}]   ;;  %s2666_s5 = inlined_call_operand.vmem [shape: f32[1,128], index: 5, kind: input, shape index: {}]   ;;  %s2667_s6 = inlined_call_operand.vmem [shape: bf16[256,64], index: 6, kind: input, shape index: {}]   ;;  %s2668_s7 = inlined_call_operand.vmem [shape: f32[1,64], index: 7, kind: input, shape index: {}]   ;;  %s2669_s8 = inlined_call_operand.hbm [shape: f32[2,16,256], index: 8, kind: output, shape index: {0}]   ;;  %s2670_s9 = inlined_call_operand.hbm [shape: bf16[2,16,64], index: 9, kind: output, shape index: {1}]   ;;  %s2671_s10 = inlined_call_operand.hbm [shape: bf16[2,16,128], index: 10, kind: output, shape index: {2}]   ;;  %s2672_s11 = inlined_call_operand.hbm [shape: bf16[2,16,128], index: 11, kind: output, shape index: {3}]  }
   0x1   :  { %2682 = sst [smem:[#allocation20_spill]] %s2661_s0 }
   0x2   :  { %2683 = sst [smem:[#allocation21_spill]] %s2662_s1 }
   0x3   :  { %2684 = sst [smem:[#allocation22_spill]] %s2663_s2 }
   0x4   :  { %2685 = sst [smem:[#allocation23_spill]] %s2664_s3 }
   0x5   :  { %2686 = sst [smem:[#allocation24_spill]] %s2670_s9 }
   0x6   :  { %2687 = sst [smem:[#allocation25_spill]] %s2671_s10 }
   0x7   :  { %17 = vsyncpa [#allocation3], 0 }
   0x8   :  { %19 = vsyncpa [#allocation3 + $0x1], 0 }
   0x9   :  { %20 = vsyncpa [#allocation6], 0 }
   0xa   :  { %21 = vsyncpa [#allocation4], 0 }
   0xb   :  { %23 = vsyncpa [#allocation4 + $0x1], 0 }
   0xc   :  { %24 = vsyncpa [#allocation9], 0 }
   0xd   :  { %26 = vsyncpa [#allocation9 + $0x1], 0 }
   0xe   :  { %27 = vsyncpa [#allocation12], 0 }
   0xf   :  { %29 = vsyncpa [#allocation12 + $0x1], 0  ;;  %s2177_s17 = smov 0   ;;  %s2179_s18 = smov 0  }
  0x10   :  { %s2181_s19 = smov 0   ;;  %s2183_s20 = smov 0  }
  0x11   :  { %s2185_s21 = smov 0   ;;  %s2187_s22 = smov 0  }
  0x12 LB: > { %2688 = sst [smem:[#allocation18_spill]] %s2080_s17  ;;  %s2208_s23 = sadd.s32 4294967295, %s2100_s22   ;;  %s2100_s22 = sphi %s2187_s22, %s35_s22   ;;  %s2096_s21 = sphi %s2185_s21, %s2719_s21   ;;  %s2092_s20 = sphi %s2183_s20, %s2718_s20   ;;  %s2088_s19 = sphi %s2181_s19, %s2717_s19   ;;  %s2084_s18 = sphi %s2179_s18, %s2716_s18   ;;  %s2080_s17 = sphi %s2177_s17, %s2715_s17  }
  0x13   : > { %s2673_s24 = sadd.s32 4294967294, %s2100_s22   ;;  %p97_p0 = scmp.ne.s32.totalorder %s2084_s18, %s2080_s17 }
  0x14   : > { %p2676_p1 = scmp.eq.s32.totalorder %s2208_s23, 0  ;;  %p255_p3 = scmp.eq.s32.totalorder %s2673_s24, 1 }
  0x15   : > { %p1543_p5 = scmp.ge.s32.totalorder %s2100_s22, 1  ;;  %p346_p7 = scmp.lt.s32.totalorder %s2100_s22, 3 }
  0x16   : > { %p2219_p4 = por %p2676_p1, %p97_p0  ;;  %p2224_p6 = por %p255_p3, %p97_p0 }
  0x17   : > { %p2229_p8 = pnand %p1543_p5, %p346_p7  ;;  %s2102_s28 = smov [#allocation5]  }
  0x18   : > { %s2689_s25 = scalar_select %p2219_p4, 1, 0 }
  0x19   : > { %s2690_s26 = scalar_select %p2224_p6, 1, 0 }
  0x1a   : > { %s2692_s27 = scalar_select %p2229_p8, 1, 0 }
  0x1b   : > { %2691 = sst [smem:[#allocation19_spill]] %s2690_s26  ;;  %s358_s29 = sshll.u32 %s2102_s28, 4  ;;  %s359_s29 = int_to_ptr.vmem [resolvable:$true] %s358_s29 }
  0x1c   : > { %p1705_p9 = pneg %p2229_p8  ;;  %s47_s12 = sadd.s32 1, %s2096_s21 }
  0x1d   : > { %s2694_s2 = sld [smem:[#allocation22_spill]] }
  0x1e   : > { %p2238_p11 = pnand %p1705_p9, %p2676_p1 }
  0x20   : > { %p1866_p13 = pneg %p2238_p11 }
  0x23   : > { %s1864_s15 = scalar_lea.hbm %s2694_s2, 4608 }
  0x24   : > { %p1865_p12 = scmp.ne.s32.totalorder %s2694_s2, %s1864_s15  ;;  %p1871_p5 = scmp.lt.u32.totalorder %s1864_s15, %s2694_s2 }
  0x26   : > { %p1867_p0 = pnand %p1866_p13, %p1865_p12 }
  0x28   : > { %p1868_p3 = pneg %p1867_p0 }
  0x2a   : > { %p1873_p7 = pnand %p1871_p5, %p1868_p3 }
  0x2c   : > { %1876 = shalt.err (!%p1873_p7)
}
  0x2d   : > { %s1877_s17 = scalar_lea.vmem %s359_s29, 4608  ;;  %p1885_p2 = scmp.lt.s32.totalorder %s359_s29, %s359_s29 }
  0x2e   : > { %p1878_p9 = scmp.ne.s32.totalorder %s359_s29, %s1877_s17  ;;  %p1886_p6 = scmp.lt.s32.totalorder %s1877_s17, %s1877_s17 }
  0x30   : > { %p1880_p10 = pnand %p1878_p9, %p1866_p13  ;;  %p1887_p4 = por %p1886_p6, %p1885_p2 }
  0x32   : > { %p1881_p1 = pneg %p1880_p10 }
  0x34   : > { %p1888_p8 = pnand %p1887_p4, %p1881_p1 }
  0x36   : > { %1891 = shalt.err (!%p1888_p8)
}
  0x37   : > { %s2103_s24 = smov 192   ;;  %s2104_s26 = smov 12  }
  0x38   : > { %1708 = dma.hbm_to_vmem [thread:$0]  (!%p2238_p11), %s2694_s2, 4608, %s359_s29, [#allocation6], %s2103_s24, %s2103_s24, %s2104_s26  }
  0x39   : > { %p49_p1 = scmp.ge.s32.totalorder %s47_s12, 2  ;;  %s84_s17 = sadd.s32 1, %s2088_s19 }
  0x3a   : > { %p91_p2 = scmp.ne.s32.totalorder %s2088_s19, %s2084_s18  ;;  %p92_p4 = scmp.eq.s32.totalorder %s2100_s22, 0 }
  0x3b   : > { %s2721_s12 = smov (%p49_p1, %s47_s12), 0  ;;  %p2696_p8 = scmp.eq.s32.totalorder %s2208_s23, 1 }
  0x3c   : > { %p2265_p6 = por %p92_p4, %p91_p2  ;;  %s79_s30 = ssub.s32 %s2096_s21, %s2721_s12 }
  0x3d   : > { %p2271_p10 = por %p2696_p8, %p91_p2  ;;  %p1727_p12 = scmp.lt.s32.totalorder %s2100_s22, 2 }
  0x3e   : > { %p82_p11 = scmp.eq.s32.totalorder %s79_s30, 0  ;;  %s401_s29 = sand.u32 1, %s2088_s19  }
  0x3f   : > { %s1546_s28 = sshll.u32 %s401_s29, 5  ;;  %s1647_s26 = sshll.u32 %s2096_s21, 9 }
  0x40   : > { %s2280_s24 = scalar_select %p82_p11, %s2088_s19, %s84_s17  }
  0x41   : > { %s2698_s1 = sld [smem:[#allocation21_spill]]  ;;  %s405_s10 = scalar_lea.vmem [#allocation2], %s1546_s28 }
  0x42   : > { %s415_s9 = sshll.u32 %s405_s10, 4  ;;  %p2292_p13 = pnand %p1727_p12, %p2265_p6  ;;  %s2288_s9 = int_to_ptr.vmem [resolvable:$true] %s415_s9 }
  0x43   : > { %s2296_s17 = scalar_lea.sflag [#allocation3], %s401_s29 }
  0x44   : > { %p1894_p3 = pneg %p2292_p13 }
  0x47   : > { %s2286_s2 = scalar_lea.hbm %s2698_s1, %s1647_s26  ;;  %s1897_s15 = scalar_lea.hbm %s2698_s1, 1024 }
  0x48   : > { %s1892_s13 = scalar_lea.hbm %s2286_s2, 512  ;;  %p1898_p9 = scmp.lt.u32.totalorder %s2286_s2, %s2698_s1 }
  0x49   : > { %p1893_p0 = scmp.ne.s32.totalorder %s2286_s2, %s1892_s13  ;;  %p1899_p1 = scmp.lt.u32.totalorder %s1897_s15, %s1892_s13 }
  0x4a   : > { %p1901_p4 = scmp.lt.u32.totalorder %s1892_s13, %s2286_s2 }
  0x4b   : > { %p1895_p5 = pnand %p1894_p3, %p1893_p0  ;;  %p1900_p2 = por %p1899_p1, %p1898_p9 }
  0x4d   : > { %p1896_p7 = pneg %p1895_p5  ;;  %p1902_p6 = por %p1901_p4, %p1900_p2 }
  0x4f   : > { %p1903_p8 = pnand %p1902_p6, %p1896_p7 }
  0x51   : > { %1906 = shalt.err (!%p1903_p8)
}
  0x52   : > { %s1907_s29 = scalar_lea.vmem %s2288_s9, 512  ;;  %s2105_s10 = smov [#allocation2]  }
  0x53   : > { %p1908_p12 = scmp.ne.s32.totalorder %s2288_s9, %s1907_s29  ;;  %s1912_s28 = sshll.u32 %s2105_s10, 4  ;;  %s1913_s28 = int_to_ptr.vmem [resolvable:$false] %s1912_s28 }
  0x54   : > { %s1914_s26 = scalar_lea.vmem %s1913_s28, 1024  ;;  %p1915_p5 = scmp.lt.s32.totalorder %s2288_s9, %s1913_s28 }
  0x55   : > { %p1910_p11 = pnand %p1908_p12, %p1894_p3  ;;  %p1916_p9 = scmp.lt.s32.totalorder %s1914_s26, %s1907_s29 }
  0x57   : > { %p1911_p0 = pneg %p1910_p11  ;;  %p1917_p1 = por %p1916_p9, %p1915_p5 }
  0x59   : > { %p1918_p2 = pnand %p1917_p1, %p1911_p0 }
  0x5b   : > { %1921 = shalt.err (!%p1918_p2)
}
  0x5c   : > { %s2106_s13 = smov 256   ;;  %s2107_s15 = smov 16  }
  0x5d   : > { %1712 = dma.hbm_to_vmem [thread:$0]  (!%p2292_p13), %s2286_s2, 512, %s2288_s9, %s2296_s17, %s2106_s13, %s2106_s13, %s2107_s15  }
  0x5e   : > { %p2700_p3 = scmp.ne.s32.totalorder %s2692_s27, 0 }
  0x5f   : > { %s2327_s14 = sand.u32 (!%p2700_p3), 1, %s2084_s18   ;;  %p2701_p7 = scmp.ne.s32.totalorder (!%p2700_p3), %s2689_s25, 0 }
  0x60   : > { %427 = sbr.rel (%p2700_p3) target bundleno = 633 (0x279), region = 52  ;;  %s1550_s29 = sshll.u32 (!%p2700_p3), %s2327_s14, 5 }
  0x61   : > { %s430_s10 = scalar_lea.sflag (!%p2700_p3), [#allocation3], %s2327_s14  ;;  %s2333_s28 = scalar_lea.vmem (!%p2700_p3), [#allocation2], %s1550_s29 }
  0x67   : > { %2059 = dma.done.wait (%p2701_p7), %s430_s10, 512  }
  0x68   : > { %2061 = vsyncadd (%p2701_p7), %s430_s10, 4294966784  ;;  %p2702_p13 = scmp.eq.s32.totalorder %s2208_s23, 0 }
  0x6a   : > { %2063 = dma.done.wait (%p2702_p13), [#allocation6], 4608   ;;  %p2703_p4 = pmov %p2702_p13 }
  0x6b   : > { %v2108_v0 = vmov 0   ;;  %v1788_v1 = vld [vmem:[#allocation5 + $0x4] ss:$12 sps:$4 sm:$0xff]   ;;  %v1790_v2 = vld [vmem:[#allocation5] ss:$12 sps:$4 sm:$0xff]   ;;  %p502_p6 = scmp.lt.s32.totalorder %s2092_s20, 1 }
  0x6c   : > { %2065 = vsyncadd (%p2703_p4), [#allocation6], 4294962688  ;;  %832 = vmatprep.subr.bf16.mxu1 %v2108_v0  ;;  %789 = vmatprep.subr.bf16.mxu0 %v1788_v1  ;;  %v1791_v3 = vld [vmem:[#allocation5 + $0x1c] ss:$12 sps:$4 sm:$0xff]   ;;  %v1793_v4 = vld [vmem:[#allocation5 + $0x18] ss:$12 sps:$4 sm:$0xff]  }
  0x6d   : > { %790 = vmatpush1.bf16.msra.mxu0 %v1790_v2  ;;  %v1794_v5 = vld [vmem:[#allocation5 + $0x34] ss:$12 sps:$4 sm:$0xff]   ;;  %s503_s2 = scalar_select %p502_p6, %s2092_s20, 1  ;;  %v1796_v6 = vld [vmem:[#allocation5 + $0x30] ss:$12 sps:$4 sm:$0xff]   ;;  %vm785_vm0 = vcmask 523264  }
  0x6e   : > { %791 = vmatprep.subr.bf16.mxu0 %v1791_v3  ;;  %v1797_v7 = vld [vmem:[#allocation5 + $0x4c] ss:$12 sps:$4 sm:$0xff]   ;;  %v1799_v8 = vld [vmem:[#allocation5 + $0x48] ss:$12 sps:$4 sm:$0xff]   ;;  %v1800_v9 = vld [vmem:[#allocation5 + $0x64] ss:$12 sps:$4 sm:$0xff]  }
  0x6f   : > { %s1648_s9 = sshll.u32 %s503_s2, 5  ;;  %s2704_s0 = sld [smem:[#allocation20_spill]]  ;;  %v1802_v10 = vld [vmem:[#allocation5 + $0x60] ss:$12 sps:$4 sm:$0xff]   ;;  %v1803_v11 = vld [vmem:[#allocation5 + $0x7c] ss:$12 sps:$4 sm:$0xff]  }
  0x70   : > { %v1805_v14 = vld [vmem:[#allocation5 + $0x78] ss:$12 sps:$4 sm:$0xff]   ;;  %v1824_v16 = vld [vmem:[#allocation5 + $0x8] ss:$12 sps:$4 sm:$0xff]   ;;  %v1825_v18 = vld [vmem:[#allocation5 + $0x20] ss:$12 sps:$4 sm:$0xff]  }
  0x71   : > { %792 = vmatpush1.bf16.msra.mxu0 %v1793_v4  ;;  %v1806_v17 = vld [vmem:[#allocation5 + $0x94] ss:$12 sps:$4 sm:$0xff]   ;;  %833 = vmatpush1.bf16.msra.mxu1 %v1824_v16  ;;  %v1808_v19 = vld [vmem:[#allocation5 + $0x90] ss:$12 sps:$4 sm:$0xff]   ;;  %v1809_v20 = vld [vmem:[#allocation5 + $0xac] ss:$12 sps:$4 sm:$0xff]  }
  0x72   : > { %793 = vmatprep.subr.bf16.mxu0 %v1794_v5  ;;  %834 = vmatprep.subr.bf16.mxu1 %v2108_v0  ;;  %v1826_v21 = vld [vmem:[#allocation5 + $0x38] ss:$12 sps:$4 sm:$0xff]   ;;  %v1811_v22 = vld [vmem:[#allocation5 + $0xa8] ss:$12 sps:$4 sm:$0xff]   ;;  %v1827_v24 = vld [vmem:[#allocation5 + $0x50] ss:$12 sps:$4 sm:$0xff]  }
  0x73   : > { %v1812_v23 = vld [vmem:[#allocation5 + $0xc4] ss:$12 sps:$4 sm:$0xff]   ;;  %v1814_v25 = vld [vmem:[#allocation5 + $0xc0] ss:$12 sps:$4 sm:$0xff]   ;;  %v1815_v26 = vld [vmem:[#allocation5 + $0xdc] ss:$12 sps:$4 sm:$0xff]  }
  0x74   : > { %v1828_v27 = vld [vmem:[#allocation5 + $0x68] ss:$12 sps:$4 sm:$0xff]   ;;  %v1817_v28 = vld [vmem:[#allocation5 + $0xd8] ss:$12 sps:$4 sm:$0xff]   ;;  %v1829_v30 = vld [vmem:[#allocation5 + $0x80] ss:$12 sps:$4 sm:$0xff]  }
  0x75   : > { %794 = vmatpush1.bf16.msra.mxu0 %v1796_v6  ;;  %s2349_s30 = scalar_lea.vmem %s2704_s0, %s1648_s9  ;;  %835 = vmatpush1.bf16.msra.mxu1 %v1825_v18  ;;  %v1818_v29 = vld [vmem:[#allocation5 + $0xf4] ss:$12 sps:$4 sm:$0xff]   ;;  %v1820_v31 = vld [vmem:[#allocation5 + $0xf0] ss:$12 sps:$4 sm:$0xff]   ;;  %v1821_v32 = vld [vmem:[#allocation5 + $0x10c] ss:$12 sps:$4 sm:$0xff]  }
  0x76   : > { %795 = vmatprep.subr.bf16.mxu0 %v1797_v7  ;;  %v519_v12 = vld [vmem:[%s2349_s30 + $0x8] sm:$0xff]  ;;  %v521_v13 = vld [vmem:[%s2349_s30 + $0x18] sm:$0xff]  ;;  %836 = vmatprep.subr.bf16.mxu1 %v2108_v0  ;;  %v518_v35 = vld [vmem:[%s2349_s30] sm:$0xff]  ;;  %s2705_s3 = sld [smem:[#allocation23_spill]]  ;;  %s2494_s10 = sshll.u32 %s2092_s20, 7 }
  0x77   : > { %v575_v15 = vpack.c.bf16 %v521_v13, %v519_v12  ;;  %v1830_v33 = vld [vmem:[#allocation5 + $0x98] ss:$12 sps:$4 sm:$0xff]   ;;  %v1823_v34 = vld [vmem:[#allocation5 + $0x108] ss:$12 sps:$4 sm:$0xff]   ;;  %v1831_v37 = vld [vmem:[#allocation5 + $0xb0] ss:$12 sps:$4 sm:$0xff]  }
  0x78   : > { %v520_v36 = vld [vmem:[%s2349_s30 + $0x10] sm:$0xff]  ;;  %v1840_v38 = vld [vmem:[%s2667_s6 + $0x40] sm:$0xff]   ;;  %v1843_v42 = vld [vmem:[%s2667_s6 + $0x48] sm:$0xff]   ;;  %s1655_s2 = sshll.u32 %s2092_s20, 9  ;;  %s1236_s17 = scalar_lea.sflag [#allocation4], %s2327_s14 }
  0x79   : > { %796 = vmatpush1.bf16.msra.mxu0 %v1799_v8  ;;  %1594 = vmatprep.mubr.msk.bf16.mxu0 %vm785_vm0, %v575_v15  ;;  %v574_v39 = vpack.c.bf16 %v520_v36, %v518_v35  ;;  %v1832_v40 = vld [vmem:[#allocation5 + $0xc8] ss:$12 sps:$4 sm:$0xff]   ;;  %v1841_v41 = vld [vmem:[%s2667_s6] sm:$0xff]   ;;  %v1849_v48 = vld [vmem:[%s2667_s6 + $0x58] sm:$0xff]   ;;  %s2502_s30 = scalar_lea.hbm %s2669_s8, %s1655_s2 }
  0x7a   : > { %797 = vmatprep.subr.bf16.mxu0 %v1800_v9  ;;  %1595 = vmatprep.mubr.msk.bf16.mxu1 %vm785_vm0, %v575_v15  ;;  %v1833_v43 = vld [vmem:[#allocation5 + $0xe0] ss:$12 sps:$4 sm:$0xff]   ;;  %v1846_v45 = vld [vmem:[%s2667_s6 + $0x50] sm:$0xff]   ;;  %v1834_v47 = vld [vmem:[#allocation5 + $0xf8] ss:$12 sps:$4 sm:$0xff]  }
  0x7b   : > { %837 = vmatpush1.bf16.msra.mxu1 %v1826_v21  ;;  %v1844_v44 = vld [vmem:[%s2667_s6 + $0x8] sm:$0xff]   ;;  %v1847_v46 = vld [vmem:[%s2667_s6 + $0x10] sm:$0xff]   ;;  %v1850_v49 = vld [vmem:[%s2667_s6 + $0x18] sm:$0xff]  }
  0x7c   : > { %838 = vmatprep.subr.bf16.mxu1 %v2108_v0  ;;  %v1835_v50 = vld [vmem:[#allocation5 + $0x110] ss:$12 sps:$4 sm:$0xff]   ;;  %v1852_v51 = vld [vmem:[%s2667_s6 + $0x60] sm:$0xff]   ;;  %v1855_v54 = vld [vmem:[%s2667_s6 + $0x68] sm:$0xff]  }
  0x7d   : > { %798 = vmatpush1.bf16.msra.mxu0 %v1802_v10  ;;  %v1853_v52 = vld [vmem:[%s2667_s6 + $0x20] sm:$0xff]   ;;  %v1856_v55 = vld [vmem:[%s2667_s6 + $0x28] sm:$0xff]   ;;  %v1838_v57 = vld [vmem:[%s2665_s4 + $0x10] sm:$0xff]  }
  0x7e   : > { %799 = vmatprep.subr.bf16.mxu0 %v1803_v11  ;;  %v1836_v53 = vld [vmem:[%s2665_s4] sm:$0xff]   ;;  %v1837_v56 = vld [vmem:[%s2665_s4 + $0x8] sm:$0xff]   ;;  %v1839_v58 = vld [vmem:[%s2665_s4 + $0x18] sm:$0xff]  }
  0x7f   : > { %839 = vmatpush1.bf16.msra.mxu1 %v1827_v24  ;;  %v1842_v59 = vld [vmem:[%s2665_s4 + $0x20] sm:$0xff]   ;;  %v1845_v60 = vld [vmem:[%s2665_s4 + $0x28] sm:$0xff]   ;;  %v1848_v61 = vld [vmem:[%s2665_s4 + $0x30] sm:$0xff]  }
  0x80   : > { %840 = vmatprep.subr.bf16.mxu1 %v2108_v0  ;;  %v1851_v62 = vld [vmem:[%s2665_s4 + $0x38] sm:$0xff]   ;;  %v1854_v63 = vld [vmem:[%s2665_s4 + $0x40] sm:$0xff]   ;;  %v1857_v1 = vld [vmem:[%s2665_s4 + $0x48] sm:$0xff]  }
  0x81   : > { %800 = vmatpush1.bf16.msra.mxu0 %v1805_v14  ;;  %v1858_v2 = vld [vmem:[%s2667_s6 + $0x70] sm:$0xff]   ;;  %v1861_v5 = vld [vmem:[%s2667_s6 + $0x78] sm:$0xff]   ;;  %v523_v8 = vld [vmem:[%s2333_s28 + $0x8] sm:$0xff]  ;;  %v578_v14 = vlaneseq }
  0x82   : > { %801 = vmatprep.subr.bf16.mxu0 %v1806_v17  ;;  %v1859_v3 = vld [vmem:[%s2667_s6 + $0x30] sm:$0xff]   ;;  %v1862_v6 = vld [vmem:[%s2667_s6 + $0x38] sm:$0xff]   ;;  %v522_v11 = vld [vmem:[%s2333_s28] sm:$0xff] }
  0x83   : > { %841 = vmatpush1.bf16.msra.mxu1 %v1828_v27  ;;  %v1860_v4 = vld [vmem:[%s2665_s4 + $0x50] sm:$0xff]   ;;  %v1863_v7 = vld [vmem:[%s2665_s4 + $0x58] sm:$0xff]   ;;  %v579_v15 = vshrl.u32 %v578_v14, 7  ;;  %v576_v16 = vld [vmem:[%s2705_s3] sm:$0x7] }
  0x84   : > { %842 = vmatprep.subr.bf16.mxu1 %v2108_v0  ;;  %v525_v9 = vld [vmem:[%s2333_s28 + $0x18] sm:$0xff]  ;;  %v524_v12 = vld [vmem:[%s2333_s28 + $0x10] sm:$0xff]  ;;  %s2474_s28 = scalar_lea.vmem [#allocation7], %s1550_s29  ;;  %s2481_s29 = sshll.u32 %s2327_s14, 3 }
  0x85   : > { %802 = vmatpush1.bf16.msra.mxu0 %v1808_v19  ;;  %v1101_v10 = vpack.c.bf16 %v525_v9, %v523_v8  ;;  %v1100_v13 = vpack.c.bf16 %v524_v12, %v522_v11  ;;  %v584_v17 = vsub.s32 1, %v579_v15  ;;  %s2681_s27 = scalar_lea.vmem [#allocation10], %s2481_s29  ;;  %s1267_s26 = sshll.u32 %s2474_s28, 4  ;;  %s2491_s26 = int_to_ptr.vmem [resolvable:$true] %s1267_s26 }
  0x86   : > { %803 = vmatprep.subr.bf16.mxu0 %v1809_v20  ;;  %s500_s13 = scalar_lea.vmem [#allocation11], %s2481_s29 }
  0x87   : > { %843 = vmatpush1.bf16.msra.mxu1 %v1829_v30  ;;  %v585_v19 = vrot.slane %v576_v16, %v584_v17  ;;  %v588_v30 = vsub.s32 2, %v579_v15  ;;  %s1321_s15 = sshll.u32 %s500_s13, 4  ;;  %s2496_s15 = int_to_ptr.vmem [resolvable:$true] %s1321_s15 }
  0x88   : > { %844 = vmatprep.subr.bf16.mxu1 %v2108_v0 }
  0x89   : > { %804 = vmatpush1.bf16.msra.mxu0 %v1811_v22 }
  0x8a   : > { %805 = vmatprep.subr.bf16.mxu0 %v1812_v23 }
  0x8b   : > { %845 = vmatpush1.bf16.msra.mxu1 %v1830_v33 }
  0x8c   : > { %846 = vmatprep.subr.bf16.mxu1 %v2108_v0 }
  0x8d   : > { %806 = vmatpush1.bf16.msra.mxu0 %v1814_v25 }
  0x8e   : > { %807 = vmatprep.subr.bf16.mxu0 %v1815_v26 }
  0x8f   : > { %847 = vmatpush1.bf16.msra.mxu1 %v1831_v37 }
  0x90   : > { %848 = vmatprep.subr.bf16.mxu1 %v2108_v0 }
  0x91   : > { %808 = vmatpush1.bf16.msra.mxu0 %v1817_v28 }
  0x92   : > { %809 = vmatprep.subr.bf16.mxu0 %v1818_v29 }
  0x93   : > { %849 = vmatpush1.bf16.msra.mxu1 %v1832_v40 }
  0x94   : > { %850 = vmatprep.subr.bf16.mxu1 %v2108_v0 }
  0x95   : > { %810 = vmatpush1.bf16.msra.mxu0 %v1820_v31  ;;  %v589_v31 = vrot.slane %v576_v16, %v588_v30 }
  0x96   : > { %811 = vmatprep.subr.bf16.mxu0 %v1821_v32 }
  0x97   : > { %851 = vmatpush1.bf16.msra.mxu1 %v1833_v43 }
  0x98   : > { %852 = vmatprep.subr.bf16.mxu1 %v2108_v0 }
  0x99   : > { %812 = vmatpush1.bf16.msra.mxu0 %v1823_v34 }
  0x9a   : > { %1669 = vmatprep.subr.bf16.mxu0 %v1840_v38 }
  0x9b   : > { %853 = vmatpush1.bf16.msra.mxu1 %v1834_v47 }
  0x9c   : > { %822 = vmatmul.mubr.bf16.vlgmr.msra.gmra.mrb[0].mxu0 %v574_v39  ;;  %854 = vmatprep.subr.bf16.mxu1 %v2108_v0 }
  0x9d   : > { %1670 = vmatpush3.bf16.msra.mxu0 %v1841_v41 }
  0x9e   : > { %1671 = vmatprep.subr.bf16.mxu0 %v1843_v42  ;;  %v1617_v42 = vld [vmem:[%s2666_s5] ss:$0 sm:$0xff] }
  0x9f   : > { %855 = vmatpush1.bf16.msra.mxu1 %v1835_v50 }
  0xa0   : > { %1184 = vmatprep.subr.bf16.mxu1 %v2108_v0 }
  0xa1   : > { %1672 = vmatpush3.bf16.msra.mxu0 %v1844_v44 }
  0xa2   : > { %1673 = vmatprep.subr.bf16.mxu0 %v1846_v45  ;;  %865 = vmatmul.mubr.bf16.vlgmr.msra.gmra.mrb[0].mxu1 %v574_v39 }
  0xa3   : > { %1185 = vmatpush1.bf16.msra.mxu1 %v1836_v53  ;;  %1630 = vmatprep.mubr.msk.bf16.mxu1 %vm785_vm0, %v1101_v10 }
  0xa4   : > { %1186 = vmatprep.subr.bf16.mxu1 %v2108_v0 }
  0xa5   : > { %1674 = vmatpush3.bf16.msra.mxu0 %v1847_v46 }
  0xa6   : > { %1675 = vmatprep.subr.bf16.mxu0 %v1849_v48 }
  0xa7   : > { %1187 = vmatpush1.bf16.msra.mxu1 %v1837_v56 }
  0xa8   : > { %1188 = vmatprep.subr.bf16.mxu1 %v2108_v0 }
  0xa9   : > { %1676 = vmatpush3.bf16.msra.mxu0 %v1850_v49 }
  0xaa   : > { %1677 = vmatprep.subr.bf16.mxu0 %v1852_v51 }
  0xab   : > { %1189 = vmatpush1.bf16.msra.mxu1 %v1838_v57 }
  0xac   : > { %1190 = vmatprep.subr.bf16.mxu1 %v2108_v0 }
  0xad   : > { %1678 = vmatpush3.bf16.msra.mxu0 %v1853_v52 }
  0xae   : > { %1679 = vmatprep.subr.bf16.mxu0 %v1855_v54 }
  0xaf   : > { %1191 = vmatpush1.bf16.msra.mxu1 %v1839_v58 }
  0xb0   : > { %1192 = vmatprep.subr.bf16.mxu1 %v2108_v0 }
  0xb1   : > { %1680 = vmatpush3.bf16.msra.mxu0 %v1856_v55 }
  0xb2   : > { %1681 = vmatprep.subr.bf16.mxu0 %v1858_v2 }
  0xb3   : > { %1193 = vmatpush1.bf16.msra.mxu1 %v1842_v59 }
  0xb4   : > { %1194 = vmatprep.subr.bf16.mxu1 %v2108_v0 }
  0xb5   : > { %1682 = vmatpush3.bf16.msra.mxu0 %v1859_v3 }
  0xb6   : > { %1683 = vmatprep.subr.bf16.mxu0 %v1861_v5 }
  0xb7   : > { %1195 = vmatpush1.bf16.msra.mxu1 %v1845_v60 }
  0xb8   : > { %1196 = vmatprep.subr.bf16.mxu1 %v2108_v0 }
  0xb9   : > { %1684 = vmatpush3.bf16.msra.mxu0 %v1862_v6 }
  0xbb   : > { %1197 = vmatpush1.bf16.msra.mxu1 %v1848_v61 }
  0xbc   : > { %1198 = vmatprep.subr.bf16.mxu1 %v2108_v0 }
  0xbf   : > { %1199 = vmatpush1.bf16.msra.mxu1 %v1851_v62 }
  0xc0   : > { %1200 = vmatprep.subr.bf16.mxu1 %v2108_v0 }
  0xc3   : > { %1201 = vmatpush1.bf16.msra.mxu1 %v1854_v63 }
  0xc4   : > { %1202 = vmatprep.subr.bf16.mxu1 %v2108_v0 }
  0xc7   : > { %1203 = vmatpush1.bf16.msra.mxu1 %v1857_v1 }
  0xc8   : > { %1204 = vmatprep.subr.bf16.mxu1 %v2108_v0 }
  0xcb   : > { %1205 = vmatpush1.bf16.msra.mxu1 %v1860_v4 }
  0xcc   : > { %1206 = vmatprep.subr.bf16.mxu1 %v2108_v0  ;;  %v580_v0 = vsub.s32 0, %v579_v15 }
  0xce   : > { %v581_v18 = vrot.slane %v576_v16, %v580_v0 }
  0xcf   : > { %1207 = vmatpush1.bf16.msra.mxu1 %v1863_v7 }
  0xd2   : > { %1217 = vmatmul.mubr.bf16.vlgmr.msra.gmra.mrb[4].mxu1 %v1100_v13 }
 0x16f   : > { %v823_v20 = vpop.f32.mrb[0].mxu0 }
 0x170   : > { %v824_v21 = vadd.f32 %v823_v20, %v581_v18  ;;  %v825_v22 = vpop.f32.mrb[1].mxu0 }
 0x171   : > { %v826_v23 = vadd.f32 %v825_v22, %v585_v19  ;;  %v827_v24 = vpop.f32.mrb[2].mxu0 }
 0x172   : > { %873 = vst [vmem:[%s2474_s28] sm:$0xff] %v824_v21  ;;  %v828_v25 = vadd.f32 %v827_v24, %v581_v18  ;;  %v829_v26 = vpop.f32.mrb[3].mxu0 }
 0x173   : > { %874 = vst [vmem:[%s2474_s28 + $0x8] sm:$0xff] %v826_v23  ;;  %v830_v27 = vadd.f32 %v829_v26, %v585_v19 }
 0x174   : > { %875 = vst [vmem:[%s2474_s28 + $0x10] sm:$0xff] %v828_v25  ;;  %v909_v28 = vpack.c.bf16 %v828_v25, %v824_v21 }
 0x175   : > { %876 = vst [vmem:[%s2474_s28 + $0x18] sm:$0xff] %v830_v27  ;;  %v910_v29 = vpack.c.bf16 %v830_v27, %v826_v23  ;;  %v866_v32 = vpop.f32.mrb[0].mxu1  ;;  %s1922_s28 = scalar_lea.vmem %s2491_s26, 512 }
 0x176   : > { %v867_v33 = vadd.f32 %v866_v32, %v589_v31  ;;  %v868_v34 = vpop.f32.mrb[1].mxu1  ;;  %p1923_p8 = scmp.ne.s32.totalorder %s2491_s26, %s1922_s28 }
 0x177   : > { %1046 = vmatprep.mubr.bf16.mxu0 %v910_v29  ;;  %v869_v35 = vpop.f32.mrb[2].mxu1 }
 0x178   : > { %1047 = vmatmul.mubr.bf16.vlgmr.msra.gmra.mrb[4].mxu0 %v909_v28  ;;  %v870_v36 = vadd.f32 %v869_v35, %v589_v31  ;;  %v871_v37 = vpop.f32.mrb[3].mxu1  ;;  %p1924_p12 = pnand %p1923_p8, %p2271_p10 }
 0x17a   : > { %v1662_v38 = vpack.c.bf16 %v870_v36, %v867_v33  ;;  %p1925_p11 = pneg %p1924_p12 }
 0x17c   : > { %1663 = vst [vmem:[%s2681_s27] sm:$0xff] %v1662_v38  }
 0x1a5   : > { %v1218_v39 = vpop.f32.mrb[4].mxu1 }
 0x1a6   : > { %v1220_v40 = vpop.f32.mrb[5].mxu1  ;;  %v1219_v44 = vadd.f32 %v1617_v42, %v1218_v39 }
 0x1a7   : > { %v1221_v41 = vpop.f32.mrb[6].mxu1 }
 0x1a8   : > { %v1223_v43 = vpop.f32.mrb[7].mxu1  ;;  %v1222_v45 = vadd.f32 %v1617_v42, %v1221_v41 }
 0x1aa   : > { %v1667_v46 = vpack.c.bf16 %v1222_v45, %v1219_v44 }
 0x1ac   : > { %1668 = vst [vmem:[%s500_s13] sm:$0xff] %v1667_v46   ;;  %s2109_s13 = smov [#allocation7]  }
 0x1ad   : > { %s1926_s27 = sshll.u32 %s2109_s13, 4  ;;  %s1927_s27 = int_to_ptr.vmem [resolvable:$false] %s1926_s27 }
 0x1ae   : > { %s1928_s0 = scalar_lea.vmem %s1927_s27, 1024  ;;  %p1929_p0 = scmp.lt.s32.totalorder %s2491_s26, %s1927_s27 }
 0x1af   : > { %p1930_p5 = scmp.lt.s32.totalorder %s1928_s0, %s1922_s28 }
 0x1b1   : > { %p1931_p9 = por %p1930_p5, %p1929_p0 }
 0x1b3   : > { %p1932_p1 = pnand %p1931_p9, %p1925_p11 }
 0x1b5   : > { %1935 = shalt.err (!%p1932_p1)
}
 0x1b6   : > { %s1936_s20 = scalar_lea.hbm %s2502_s30, 512  ;;  %s1940_s25 = scalar_lea.hbm %s2669_s8, 1024 }
 0x1b7   : > { %p1937_p2 = scmp.ne.s32.totalorder %s2502_s30, %s1936_s20  ;;  %p1941_p13 = scmp.lt.u32.totalorder %s2502_s30, %s2669_s8 }
 0x1b8   : > { %p1942_p4 = scmp.lt.u32.totalorder %s1940_s25, %s1936_s20  ;;  %p1944_p8 = scmp.lt.u32.totalorder %s1936_s20, %s2502_s30 }
 0x1b9   : > { %p1938_p3 = pnand %p1937_p2, %p2271_p10 }
 0x1ba   : > { %p1943_p6 = por %p1942_p4, %p1941_p13 }
 0x1bb   : > { %p1939_p7 = pneg %p1938_p3 }
 0x1bc   : > { %p1945_p12 = por %p1944_p8, %p1943_p6 }
 0x1be   : > { %p1946_p11 = pnand %p1945_p12, %p1939_p7 }
 0x1c0   : > { %1949 = shalt.err (!%p1946_p11)
}
 0x1c1   : > { %s2110_s0 = smov 256   ;;  %s2111_s28 = smov 16  }
 0x1c2   : > { %1697 = dma.vmem_to_hbm [thread:$0]  (%p2271_p10), %s2491_s26, 512, %s2502_s30, %s1236_s17, %s2110_s0, %s2110_s0, %s2111_s28  }
 0x1c3   : > { %s2532_s9 = scalar_lea.hbm %s2672_s11, %s2494_s10  ;;  %s1251_s25 = scalar_lea.sflag [#allocation12], %s2327_s14 }
 0x1c4   : > { %s1950_s13 = scalar_lea.vmem %s2496_s15, 128  ;;  %s2112_s27 = smov [#allocation11]  }
 0x1c5   : > { %p1951_p0 = scmp.ne.s32.totalorder %s2496_s15, %s1950_s13  ;;  %s1954_s1 = sshll.u32 %s2112_s27, 4  ;;  %s1955_s1 = int_to_ptr.vmem [resolvable:$false] %s1954_s1 }
 0x1c6   : > { %s1956_s3 = scalar_lea.vmem %s1955_s1, 256  ;;  %p1957_p1 = scmp.lt.s32.totalorder %s2496_s15, %s1955_s1 }
 0x1c7   : > { %p1952_p5 = pnand %p1951_p0, %p2271_p10  ;;  %p1958_p2 = scmp.lt.s32.totalorder %s1956_s3, %s1950_s13 }
 0x1c9   : > { %p1953_p9 = pneg %p1952_p5  ;;  %p1959_p3 = por %p1958_p2, %p1957_p1 }
 0x1cb   : > { %p1960_p7 = pnand %p1959_p3, %p1953_p9 }
 0x1cd   : > { %1963 = shalt.err (!%p1960_p7)
}
 0x1ce   : > { %s1964_s26 = scalar_lea.hbm %s2532_s9, 128  ;;  %s1968_s0 = scalar_lea.hbm %s2672_s11, 256 }
 0x1cf   : > { %p1965_p13 = scmp.ne.s32.totalorder %s2532_s9, %s1964_s26  ;;  %p1969_p8 = scmp.lt.u32.totalorder %s2532_s9, %s2672_s11 }
 0x1d0   : > { %p1970_p12 = scmp.lt.u32.totalorder %s1968_s0, %s1964_s26  ;;  %p1972_p0 = scmp.lt.u32.totalorder %s1964_s26, %s2532_s9 }
 0x1d1   : > { %p1966_p4 = pnand %p1965_p13, %p2271_p10 }
 0x1d2   : > { %p1971_p11 = por %p1970_p12, %p1969_p8 }
 0x1d3   : > { %p1967_p6 = pneg %p1966_p4 }
 0x1d4   : > { %p1973_p5 = por %p1972_p0, %p1971_p11 }
 0x1d6   : > { %p1974_p9 = pnand %p1973_p5, %p1967_p6 }
 0x1d8   : > { %1977 = shalt.err (!%p1974_p9)
}
 0x1d9   : > { %s2113_s3 = smov 64   ;;  %s2114_s2 = smov 4   ;;  %v1596_v48 = vld [vmem:[%s2668_s7] ss:$0 sm:$0xff]  ;;  %vm1063_vm1 = vcmask 519168  }
 0x1da   : > { %1700 = dma.vmem_to_hbm [thread:$0]  (%p2271_p10), %s2496_s15, 128, %s2532_s9, %s1251_s25, %s2113_s3, %s2113_s3, %s2114_s2  }
 0x1db   : > { %s1240_s27 = sand.u32 1, %s2208_s23   ;;  %s486_s26 = scalar_lea.vmem [#allocation8], %s2481_s29 }
 0x1dc   : > { %s1285_s30 = sshll.u32 %s486_s26, 4  ;;  %s2706_s14 = scalar_lea.vmem [#allocation10], %s2481_s29  ;;  %s2574_s30 = int_to_ptr.vmem [resolvable:$true] %s1285_s30 }
 0x1dd   : > { %s1303_s15 = sshll.u32 %s2706_s14, 4  ;;  %s2707_s17 = sld [smem:[#allocation24_spill]]  ;;  %s2576_s15 = int_to_ptr.vmem [resolvable:$true] %s1303_s15 }
 0x1de   : > { %s2709_s29 = sld [smem:[#allocation25_spill]]  ;;  %s2584_s13 = scalar_lea.sflag [#allocation9], %s1240_s27 }
 0x1df   : > { %s1978_s14 = scalar_lea.vmem %s2574_s30, 128  ;;  %s2115_s9 = smov [#allocation8]  }
 0x1e0   : > { %p1979_p1 = scmp.ne.s32.totalorder %s2574_s30, %s1978_s14  ;;  %s1982_s25 = sshll.u32 %s2115_s9, 4  ;;  %s1983_s25 = int_to_ptr.vmem [resolvable:$false] %s1982_s25 }
 0x1e1   : > { %p1985_p7 = scmp.lt.s32.totalorder %s2574_s30, %s1983_s25 }
 0x1e2   : > { %p1980_p2 = pnand %p1979_p1, %p2271_p10 }
 0x1e3   : > { %s2708_s0 = smov %s2707_s17  ;;  %s2572_s28 = scalar_lea.hbm %s2707_s17, %s2494_s10 }
 0x1e4   : > { %s2582_s20 = scalar_lea.hbm %s2709_s29, %s2494_s10  ;;  %p1981_p3 = pneg %p1980_p2 }
 0x1e5   : > { %s1984_s17 = scalar_lea.vmem %s1983_s25, 256 }
 0x1e6   : > { %p1986_p13 = scmp.lt.s32.totalorder %s1984_s17, %s1978_s14 }
 0x1e8   : > { %p1987_p4 = por %p1986_p13, %p1985_p7 }
 0x1ea   : > { %p1988_p6 = pnand %p1987_p4, %p1981_p3 }
 0x24b   : > { %v1685_v47 = vpop.f32.mrb[4].mxu0 }
 0x24c   : > { %v1686_v49 = vpop.f32.mrb[5].mxu0 }
 0x24d   : > { %v1687_v50 = vadd.f32 %v1686_v49, %v1685_v47  ;;  %v1688_v51 = vpop.f32.mrb[6].mxu0 }
 0x24e   : > { %v1689_v52 = vpop.f32.mrb[7].mxu0 }
 0x24f   : > { %v1049_v53 = vadd.f32 %v1687_v50, %v1596_v48  ;;  %v1690_v54 = vadd.f32 %v1689_v52, %v1688_v51 }
 0x251   : > { %v1649_v55 = vpack.c.bf16 %v1049_v53, %v1049_v53  ;;  %v1052_v56 = vadd.f32 %v1690_v54, %v1596_v48 }
 0x253   : > { %1064 = vst.msk [vmem:[%s486_s26] sm:$0xf] %vm1063_vm1, %v1649_v55  ;;  %v1650_v57 = vpack.c.bf16 %v1052_v56, %v1052_v56 }
 0x255   : > { %1065 = vst.msk [vmem:[%s486_s26 + $0x4] sm:$0xf] %vm1063_vm1, %v1650_v57 }
 0x256   : > { %1991 = shalt.err (!%p1988_p6)
}
 0x257   : > { %s1992_s10 = scalar_lea.hbm %s2572_s28, 128  ;;  %s1996_s23 = scalar_lea.hbm %s2708_s0, 256 }
 0x258   : > { %p1993_p8 = scmp.ne.s32.totalorder %s2572_s28, %s1992_s10  ;;  %p1997_p0 = scmp.lt.u32.totalorder %s2572_s28, %s2708_s0 }
 0x259   : > { %p1998_p5 = scmp.lt.u32.totalorder %s1996_s23, %s1992_s10  ;;  %p2000_p1 = scmp.lt.u32.totalorder %s1992_s10, %s2572_s28 }
 0x25a   : > { %p1994_p12 = pnand %p1993_p8, %p2271_p10 }
 0x25b   : > { %p1999_p9 = por %p1998_p5, %p1997_p0 }
 0x25c   : > { %p1995_p11 = pneg %p1994_p12 }
 0x25d   : > { %p2001_p2 = por %p2000_p1, %p1999_p9 }
 0x25f   : > { %p2002_p3 = pnand %p2001_p2, %p1995_p11 }
 0x261   : > { %2005 = shalt.err (!%p2002_p3)
}
 0x262   : > { %1698 = dma.vmem_to_hbm [thread:$0]  (%p2271_p10), %s2574_s30, 128, %s2572_s28, %s2584_s13, %s2113_s3, %s2113_s3, %s2114_s2  }
 0x263   : > { %s2006_s14 = scalar_lea.vmem %s2576_s15, 128  ;;  %s2116_s25 = smov [#allocation10]  }
 0x264   : > { %p2007_p7 = scmp.ne.s32.totalorder %s2576_s15, %s2006_s14  ;;  %s2010_s17 = sshll.u32 %s2116_s25, 4  ;;  %s2011_s17 = int_to_ptr.vmem [resolvable:$false] %s2010_s17 }
 0x265   : > { %s2012_s10 = scalar_lea.vmem %s2011_s17, 256  ;;  %p2013_p6 = scmp.lt.s32.totalorder %s2576_s15, %s2011_s17 }
 0x266   : > { %p2008_p13 = pnand %p2007_p7, %p2271_p10  ;;  %p2014_p8 = scmp.lt.s32.totalorder %s2012_s10, %s2006_s14 }
 0x268   : > { %p2009_p4 = pneg %p2008_p13  ;;  %p2015_p12 = por %p2014_p8, %p2013_p6 }
 0x26a   : > { %p2016_p11 = pnand %p2015_p12, %p2009_p4 }
 0x26c   : > { %2019 = shalt.err (!%p2016_p11)
}
 0x26d   : > { %s2020_s30 = scalar_lea.hbm %s2582_s20, 128  ;;  %s2024_s26 = scalar_lea.hbm %s2709_s29, 256 }
 0x26e   : > { %p2021_p0 = scmp.ne.s32.totalorder %s2582_s20, %s2020_s30  ;;  %p2025_p1 = scmp.lt.u32.totalorder %s2582_s20, %s2709_s29 }
 0x26f   : > { %p2026_p2 = scmp.lt.u32.totalorder %s2024_s26, %s2020_s30  ;;  %p2028_p7 = scmp.lt.u32.totalorder %s2020_s30, %s2582_s20 }
 0x270   : > { %p2022_p5 = pnand %p2021_p0, %p2271_p10 }
 0x271   : > { %p2027_p3 = por %p2026_p2, %p2025_p1 }
 0x272   : > { %p2023_p9 = pneg %p2022_p5 }
 0x273   : > { %p2029_p13 = por %p2028_p7, %p2027_p3 }
 0x275   : > { %p2030_p4 = pnand %p2029_p13, %p2023_p9 }
 0x277   : > { %2033 = shalt.err (!%p2030_p4)
}
 0x278   : > { %1699 = dma.vmem_to_hbm [thread:$0]  (%p2271_p10), %s2576_s15, 128, %s2582_s20, %s2584_s13, %s2113_s3, %s2113_s3, %s2114_s2  }
 0x279 PF: > { %s2710_s9 = sld [smem:[#allocation18_spill]]  ;;  %s2711_s14 = sld [smem:[#allocation19_spill]] }
 0x27a   : > { %p2713_p8 = scmp.ge.s32.totalorder %s2100_s22, 2 }
 0x27f   : > { %s1336_s25 = sand.u32 1, %s2710_s9   ;;  %p2712_p6 = scmp.ne.s32.totalorder %s2711_s14, 0 }
 0x280   : > { %s1337_s17 = scalar_lea.sflag [#allocation4], %s1336_s25 }
 0x281   : > { %p1714_p12 = pnand %p2713_p8, %p2712_p6 }
 0x283   : > { %2067 = dma.done.wait (!%p1714_p12), %s1337_s17, 512  }
 0x284   : > { %2069 = vsyncadd (!%p1714_p12), %s1337_s17, 4294966784  ;;  %s2714_s16 = sadd.s32 4294967294, %s2100_s22  }
 0x285   : > { %s1345_s10 = sand.u32 1, %s2714_s16  }
 0x286   : > { %s1346_s30 = scalar_lea.sflag [#allocation9], %s1345_s10 }
 0x287   : > { %2071 = dma.done.wait (!%p1714_p12), %s1346_s30, 256  }
 0x288   : > { %2073 = vsyncadd (!%p1714_p12), %s1346_s30, 4294967040  ;;  %s1364_s28 = scalar_lea.sflag [#allocation12], %s1336_s25 }
 0x289   : > { %2075 = dma.done.wait (!%p1714_p12), %s1364_s28, 128  }
 0x28a   : > { %2077 = vsyncadd (!%p1714_p12), %s1364_s28, 4294967168  ;;  %s35_s22 = sadd.s32 1, %s2100_s22   ;;  %s2715_s17 = smov %s2084_s18 }
 0x28b   : > { %p32_p10 = scmp.ge.s32.totalorder %s35_s22, 4   ;;  %s2716_s18 = smov %s2088_s19 }
 0x28c   : > { %s2717_s19 = smov %s2280_s24  ;;  %s2718_s20 = smov %s2096_s21 }
 0x28d   : > { %s2719_s21 = smov %s2721_s12  ;;  %34 = sbr.rel (!%p32_p10) target bundleno = 18 (0x12), region = 153 }
 0x294   :  { %1369 = vsyncpa [#allocation3], 1 }
 0x295   :  { %1371 = vsyncpa [#allocation3 + $0x1], 1 }
 0x296   :  { %1372 = vsyncpa [#allocation6], 1 }
 0x297   :  { %1373 = vsyncpa [#allocation4], 1 }
 0x298   :  { %1375 = vsyncpa [#allocation4 + $0x1], 1 }
 0x299   :  { %1376 = vsyncpa [#allocation9], 1 }
 0x29a   :  { %1378 = vsyncpa [#allocation9 + $0x1], 1 }
 0x29b   :  { %1379 = vsyncpa [#allocation12], 1 }
 0x29c   :  { %1381 = vsyncpa [#allocation12 + $0x1], 1 }

</bundles_post_ra>
